<compile_context>
chip_gen: v6e
topology: v6e:2x2x1
jax: 0.10.0
libtpu: 0.0.40
codegen_flags: <defaults>
</compile_context>

<pallas_src>
import functools

import jax
import jax.numpy as jnp
from jax.experimental import pallas as pl
from jax.experimental.pallas import tpu as pltpu


def _round_up(x: int, m: int) -> int:
    return ((x + m - 1) // m) * m


def _pick_tile(dim: int, pref: int, align: int) -> int:
    """Largest tile <= pref (multiple of `align`) minimizing pad-to-tile."""
    dp = _round_up(dim, align)
    if dp <= pref:
        return dp
    best = None  # (pad, -tile)  -> minimize pad, then prefer the largest tile
    t = max(align, (pref // align) * align)
    while t >= align:
        pad = _round_up(dim, t) - dim
        cand = (pad, -t)
        if best is None or cand < best:
            best = cand
        t -= align
    return -best[1]


def _vmem_limit_bytes() -> int:
    """Generation-aware VMEM budget (v7x: 64 MiB physical, v5e/v6e: 128 MiB)."""
    try:
        cap = int(pltpu.get_tpu_info().vmem_capacity_bytes)
    except Exception:
        cap = 64 * 1024 * 1024  # conservative default (v7x per-TC)
    return int(max(32 << 20, min((cap * 3) // 4, 100 << 20)))


def _matmul_bias_kernel_f32out(x_ref, w_ref, b_ref, o_ref):
    """f32 output: accumulate directly into o_ref (no scratch, no epilogue copy)."""
    k = pl.program_id(2)

    @pl.when(k == 0)
    def _():
        o_ref[...] = jnp.zeros_like(o_ref)

    o_ref[...] += jnp.dot(
        x_ref[...], w_ref[...], preferred_element_type=jnp.float32
    )

    @pl.when(k == pl.num_programs(2) - 1)
    def _():
        o_ref[...] += b_ref[...].astype(jnp.float32)


def _matmul_bias_kernel_acc(x_ref, w_ref, b_ref, o_ref, acc_ref):
    """Non-f32 output: f32 VMEM accumulator, bias added before the final cast."""
    k = pl.program_id(2)

    @pl.when(k == 0)
    def _():
        acc_ref[...] = jnp.zeros_like(acc_ref)

    acc_ref[...] += jnp.dot(
        x_ref[...], w_ref[...], preferred_element_type=jnp.float32
    )

    @pl.when(k == pl.num_programs(2) - 1)
    def _():
        o_ref[...] = (acc_ref[...] + b_ref[...].astype(jnp.float32)).astype(
            o_ref.dtype
        )


@functools.partial(
    jax.jit, static_argnames=("tm_pref", "tn_pref", "tk_pref", "mxu_dtype")
)
def _qlinear_inner_2d(x2d, weight, bias, *, tm_pref=512, tn_pref=512,
                      tk_pref=1024, mxu_dtype=None):
    M, K = x2d.shape
    Kw, N = weight.shape
    assert Kw == K, "weight must be (in_features, out_features) for x @ W"
    out_dtype = x2d.dtype

    # Sublane alignment for the M tile depends on the MXU input dtype.
    m_align = 8
    if mxu_dtype is not None and jnp.dtype(mxu_dtype) == jnp.dtype(jnp.bfloat16):
        m_align = 16

    # Divisor-aware tile selection (avoid pad-to-tile blowup, e.g. K=768).
    tm = _pick_tile(M, tm_pref, m_align)
    tk = _pick_tile(K, tk_pref, 128)
    tn = _pick_tile(N, tn_pref, 128)
    Mp, Kp, Np = _round_up(M, tm), _round_up(K, tk), _round_up(N, tn)

    # v7x megacore: keep >= 2 parallel grid points so both TensorCores work.
    if (Mp // tm) * (Np // tn) < 2:
        if Mp >= 2 * m_align:
            tm = _round_up(-(-Mp // 2), m_align)
            Mp = _round_up(M, tm)
        elif Np >= 256:
            tn = _round_up(-(-Np // 2), 128)
            Np = _round_up(N, tn)

    # Pad only when necessary (skip the HBM round-trip for aligned dims).
    x_p = x2d if (Mp, Kp) == (M, K) else jnp.pad(x2d, ((0, Mp - M), (0, Kp - K)))
    w_p = weight if (Kp, Np) == (K, N) else jnp.pad(
        weight, ((0, Kp - K), (0, Np - N)))
    b2d = bias.reshape(1, N)
    b_p = b2d if Np == N else jnp.pad(b2d, ((0, 0), (0, Np - N)))

    if mxu_dtype is not None:
        # Optional reduced-precision MXU inputs (f32 accumulation preserved).
        x_p = x_p.astype(mxu_dtype)
        w_p = w_p.astype(mxu_dtype)

    grid = (Mp // tm, Np // tn, Kp // tk)

    # Cost estimate reflecting actual re-streaming factors.
    x_bytes = Mp * Kp * jnp.dtype(x_p.dtype).itemsize * (Np // tn)
    w_bytes = Kp * Np * jnp.dtype(w_p.dtype).itemsize * (Mp // tm)
    b_bytes = Np * jnp.dtype(b_p.dtype).itemsize
    o_bytes = Mp * Np * jnp.dtype(out_dtype).itemsize
    cost = pl.CostEstimate(
        flops=2 * Mp * Np * Kp,
        transcendentals=0,
        bytes_accessed=x_bytes + w_bytes + b_bytes + o_bytes,
    )

    out_is_f32 = jnp.dtype(out_dtype) == jnp.dtype(jnp.float32)
    if out_is_f32:
        kernel = _matmul_bias_kernel_f32out
        scratch_shapes = []
    else:
        kernel = _matmul_bias_kernel_acc
        scratch_shapes = [pltpu.VMEM((tm, tn), jnp.float32)]

    out_p = pl.pallas_call(
        kernel,
        out_shape=jax.ShapeDtypeStruct((Mp, Np), out_dtype),
        grid_spec=pltpu.PrefetchScalarGridSpec(
            num_scalar_prefetch=0,
            grid=grid,
            in_specs=[
                pl.BlockSpec((tm, tk), lambda i, j, k: (i, k)),   # x tile
                pl.BlockSpec((tk, tn), lambda i, j, k: (k, j)),   # W tile
                pl.BlockSpec((1, tn), lambda i, j, k: (0, j)),    # bias tile
            ],
            out_specs=pl.BlockSpec((tm, tn), lambda i, j, k: (i, j)),
            scratch_shapes=scratch_shapes,
        ),
        compiler_params=pltpu.CompilerParams(
            dimension_semantics=("parallel", "parallel", "arbitrary"),
            vmem_limit_bytes=_vmem_limit_bytes(),
        ),
        cost_estimate=cost,
    )(x_p, w_p, b_p)

    if (Mp, Np) != (M, N):
        out_p = out_p[:M, :N]
    return out_p


# Sub-tile problems: pallas_call fixed overhead + pad-to-(8,128) dominate;
# plain XLA dot is faster there.
_SMALL_FLOP_THRESHOLD = 1 << 22  # ~4 MFLOP


def qlinear_inner_forward(x, weight, bias, *, use_pallas=None, mxu_dtype=None):
    """y = x @ weight + bias ; returns (y, None) like QLinearInner.forward."""
    *lead, H_in = x.shape
    M = 1
    for d in lead:
        M *= d
    H_out = weight.shape[1]

    flops = 2 * M * H_in * H_out
    if use_pallas is None:
        use_pallas = flops >= _SMALL_FLOP_THRESHOLD

    if not use_pallas:
        y = x @ weight + bias
        return y, None

    x2d = x.reshape(M, H_in)
    out2d = _qlinear_inner_2d(x2d, weight, bias, mxu_dtype=mxu_dtype)
    return out2d.reshape(*lead, H_out), None


if __name__ == "__main__":
    # Small shapes consistent with the module: batch=2, seq=8, hidden=32
    # (square hidden so that `x @ weight + bias` broadcasts, as in the module).
    B, S, H = 2, 8, 32

    key = jax.random.PRNGKey(0)
    kx, kw, kb = jax.random.split(key, 3)

    x = jax.random.normal(kx, (B, S, H), dtype=jnp.float32)
    bound = 1.0 / (H ** 0.5)
    weight = jax.random.uniform(kw, (H, H), dtype=jnp.float32,
                                minval=-bound, maxval=bound)
    bias = jax.random.uniform(kb, (H,), dtype=jnp.float32,
                              minval=-bound, maxval=bound)

    y_ref = x @ weight + bias

    # Force the Pallas path so the kernel itself is exercised at demo shapes.
    y, a_s = qlinear_inner_forward(x, weight, bias, use_pallas=True)
    y = jax.block_until_ready(y)
    assert a_s is None
    assert y.shape == y_ref.shape
    assert jnp.allclose(y, y_ref, atol=1e-5, rtol=1e-5), "pallas mismatch"

    # Auto path: this sub-tile problem takes the small-problem XLA fallback.
    y2, a_s2 = qlinear_inner_forward(x, weight, bias)
    y2 = jax.block_until_ready(y2)
    assert a_s2 is None
    assert jnp.allclose(y2, y_ref, atol=1e-5, rtol=1e-5), "fallback mismatch"

    print("KERNEL_OK")
</pallas_src>

<mosaic_0001>
module attributes {stable_mosaic.version = 11 : i64} {
  func.func @_matmul_bias_kernel_f32out(%arg0: i32, %arg1: i32, %arg2: i32, %arg3: memref<8x128xf32, #tpu.memory_space<vmem>>, %arg4: memref<128x128xf32, #tpu.memory_space<vmem>>, %arg5: memref<1x128xf32, #tpu.memory_space<vmem>>, %arg6: memref<8x128xf32, #tpu.memory_space<vmem>>) attributes {dimension_semantics = [#tpu.dimension_semantics<parallel>, #tpu.dimension_semantics<parallel>, #tpu.dimension_semantics<arbitrary>], iteration_bounds = array<i64: 2, 1, 1>, scalar_prefetch = 0 : i64, scratch_operands = 0 : i64, tpu.core_type = #tpu.core_type<tc>, window_params = [{transform_indices = @transform_0, window_bounds = array<i64: 8, 128>}, {transform_indices = @transform_1, window_bounds = array<i64: 128, 128>}, {transform_indices = @transform_2, window_bounds = array<i64: 1, 128>}, {transform_indices = @transform_3, window_bounds = array<i64: 8, 128>}]} {
    %c0_i32 = arith.constant 0 : i32
    %0 = arith.cmpi eq, %arg2, %c0_i32 : i32
    %1 = arith.extui %0 : i1 to i32
    %c0_i32_0 = arith.constant 0 : i32
    %2 = arith.cmpi ne, %1, %c0_i32_0 : i32
    scf.if %2 {
      %cst_10 = arith.constant 0.000000e+00 : f32
      %12 = vector.broadcast %cst_10 : f32 to vector<8x128xf32>
      %c0_11 = arith.constant 0 : index
      %c0_12 = arith.constant 0 : index
      %13 = vector.load %arg6[%c0_11, %c0_12] : memref<8x128xf32, #tpu.memory_space<vmem>>, vector<8x128xf32>
      tpu.vector_store %arg6[%c0_11, %c0_12], %12 {strides = array<i32>} : memref<8x128xf32, #tpu.memory_space<vmem>>, vector<8x128xf32>,
    } else {
    }
    %c0 = arith.constant 0 : index
    %c0_1 = arith.constant 0 : index
    %3 = vector.load %arg6[%c0, %c0_1] : memref<8x128xf32, #tpu.memory_space<vmem>>, vector<8x128xf32>
    %c0_2 = arith.constant 0 : index
    %c0_3 = arith.constant 0 : index
    %4 = vector.load %arg3[%c0_2, %c0_3] : memref<8x128xf32, #tpu.memory_space<vmem>>, vector<8x128xf32>
    %c0_4 = arith.constant 0 : index
    %c0_5 = arith.constant 0 : index
    %5 = vector.load %arg4[%c0_4, %c0_5] : memref<128x128xf32, #tpu.memory_space<vmem>>, vector<128x128xf32>
    %cst = arith.constant dense<0.000000e+00> : vector<8x128xf32>
    %6 = tpu.matmul %4, %5, %cst {dimension_numbers = #tpu.dot_dimension_numbers<[1], [0], [0], [1], [0, 0, 1, 1], [], []>} : vector<8x128xf32>, vector<128x128xf32>, vector<8x128xf32> -> vector<8x128xf32>
    %7 = arith.addf %3, %6 : vector<8x128xf32>
    %c0_6 = arith.constant 0 : index
    %c0_7 = arith.constant 0 : index
    %8 = vector.load %arg6[%c0_6, %c0_7] : memref<8x128xf32, #tpu.memory_space<vmem>>, vector<8x128xf32>
    tpu.vector_store %arg6[%c0_6, %c0_7], %7 {strides = array<i32>} : memref<8x128xf32, #tpu.memory_space<vmem>>, vector<8x128xf32>,
    %c0_i32_8 = arith.constant 0 : i32
    %9 = arith.cmpi eq, %arg2, %c0_i32_8 : i32
    %10 = arith.extui %9 : i1 to i32
    %c0_i32_9 = arith.constant 0 : i32
    %11 = arith.cmpi ne, %10, %c0_i32_9 : i32
    scf.if %11 {
      %c0_10 = arith.constant 0 : index
      %c0_11 = arith.constant 0 : index
      %12 = vector.load %arg6[%c0_10, %c0_11] : memref<8x128xf32, #tpu.memory_space<vmem>>, vector<8x128xf32>
      %c0_12 = arith.constant 0 : index
      %c0_13 = arith.constant 0 : index
      %13 = vector.load %arg5[%c0_12, %c0_13] : memref<1x128xf32, #tpu.memory_space<vmem>>, vector<1x128xf32>
      %14 = vector.broadcast %13 : vector<1x128xf32> to vector<8x128xf32>
      %15 = arith.addf %12, %14 : vector<8x128xf32>
      %c0_14 = arith.constant 0 : index
      %c0_15 = arith.constant 0 : index
      %16 = vector.load %arg6[%c0_14, %c0_15] : memref<8x128xf32, #tpu.memory_space<vmem>>, vector<8x128xf32>
      tpu.vector_store %arg6[%c0_14, %c0_15], %15 {strides = array<i32>} : memref<8x128xf32, #tpu.memory_space<vmem>>, vector<8x128xf32>,
    } else {
    }
    return
  }
  func.func @transform_0(%arg0: i32, %arg1: i32, %arg2: i32) -> (i32, i32) {
    %c0_i32 = arith.constant 0 : i32
    return %arg0, %arg2 : i32, i32
  }
  func.func @transform_1(%arg0: i32, %arg1: i32, %arg2: i32) -> (i32, i32) {
    %c0_i32 = arith.constant 0 : i32
    return %arg2, %arg1 : i32, i32
  }
  func.func @transform_2(%arg0: i32, %arg1: i32, %arg2: i32) -> (i32, i32) {
    %c0_i32 = arith.constant 0 : i32
    %c0_i32_0 = arith.constant 0 : i32
    return %c0_i32, %arg1 : i32, i32
  }
  func.func @transform_3(%arg0: i32, %arg1: i32, %arg2: i32) -> (i32, i32) {
    %c0_i32 = arith.constant 0 : i32
    return %arg0, %arg1 : i32, i32
  }
}

</mosaic_0001>

<bundles_post_ra>
// kernel: _qlinear_inner_2d.1
= control target key start
LH: loop header
LB: loop body
LE: loop exit
PB: predicated region body
PF: predicated region fallthrough
CT: control target
= control target key end

     0   :  { %8 = vsyncpa [#allocation3], 0  ;;  %s846_s0 = inlined_call_operand.vmem [shape: f32[16,128], index: 0, kind: input, shape index: {}]   ;;  %s847_s1 = inlined_call_operand.vmem [shape: f32[128,128], index: 1, kind: input, shape index: {}]   ;;  %s848_s2 = inlined_call_operand.vmem [shape: f32[1,128], index: 2, kind: input, shape index: {}]   ;;  %s849_s3 = inlined_call_operand.hbm [shape: f32[16,128], index: 3, kind: output, shape index: {}]  }
   0x1   :  { %10 = vsyncpa [#allocation3 + $0x1], 0  ;;  %s696_s12 = smov 0   ;;  %s698_s13 = smov 0  }
   0x2   :  { %s700_s14 = smov 0   ;;  %s702_s15 = smov 0  }
   0x3   :  { %s704_s16 = smov 0   ;;  %s706_s17 = smov 0  }
   0x4 LB: > { %s472_s18 = sadd.s32 4294967295, %s671_s17   ;;  %s473_s19 = sadd.s32 4294967294, %s671_s17   ;;  %s671_s17 = sphi %s706_s17, %s16_s17   ;;  %s667_s16 = sphi %s704_s16, %s856_s16   ;;  %s663_s15 = sphi %s702_s15, %s855_s15   ;;  %s659_s14 = sphi %s700_s14, %s854_s14   ;;  %s655_s13 = sphi %s698_s13, %s853_s13   ;;  %s651_s12 = sphi %s696_s12, %s852_s12  }
   0x5   : > { %s35_s20 = sadd.s32 1, %s667_s16  ;;  %s126_s21 = sadd.s32 1, %s659_s14 }
   0x6   : > { %p37_p0 = scmp.ge.s32.totalorder %s35_s20, 2  ;;  %p136_p1 = scmp.ne.s32.totalorder %s659_s14, %s655_s13 }
   0x7   : > { %p137_p2 = scmp.eq.s32.totalorder %s472_s18, 1  ;;  %p142_p3 = scmp.ne.s32.totalorder %s655_s13, %s651_s12 }
   0x8   : > { %s858_s20 = smov (%p37_p0, %s35_s20), 0  ;;  %p143_p5 = scmp.eq.s32.totalorder %s473_s19, 1 }
   0x9   : > { %p736_p4 = por %p137_p2, %p136_p1  ;;  %s121_s23 = ssub.s32 %s667_s16, %s858_s20 }
   0xa   : > { %p478_p6 = scmp.ge.s32.totalorder %s671_s17, 1  ;;  %p124_p7 = scmp.eq.s32.totalorder %s121_s23, 0 }
   0xb   : > { %p743_p8 = por %p143_p5, %p142_p3  ;;  %p189_p9 = scmp.lt.s32.totalorder %s671_s17, 3 }
   0xc   : > { %s749_s25 = scalar_select %p124_p7, %s659_s14, %s126_s21  }
   0xd   : > { %p190_p10 = pnand %p478_p6, %p189_p9 }
   0xe   : > { %p226_p11 = scmp.lt.s32.totalorder (!%p190_p10), %s663_s15, 1  ;;  %s223_s29 = sand.u32 (!%p190_p10), 1, %s655_s13  }
   0xf   : > { %193 = sbr.rel (%p190_p10) target bundleno = 261 (0x105), region = 32  ;;  %s479_s30 = sshll.u32 (!%p190_p10), %s223_s29, 3 }
  0x10   : > { %s483_s6 = sshll.u32 (!%p190_p10), %s663_s15, 7  ;;  %s225_s7 = scalar_lea.vmem (!%p190_p10), [#allocation2], %s479_s30 }
  0x11   : > { %s368_s8 = sshll.u32 (!%p190_p10), %s225_s7, 4  ;;  %s366_s11 = scalar_lea.hbm (!%p190_p10), %s849_s3, %s483_s6  ;;  %s369_s8 = int_to_ptr.vmem [resolvable:$true] %s368_s8 }
  0x12   : > { %s354_s18 = scalar_lea.sflag (!%p190_p10), [#allocation3], %s223_s29  ;;  %s595_s19 = scalar_lea.vmem (!%p190_p10), %s369_s8, 128 }
  0x13   : > { %p596_p12 = scmp.ne.s32.totalorder (!%p190_p10), %s369_s8, %s595_s19  ;;  %s675_s21 = smov (!%p190_p10), [#allocation2]  }
  0x14   : > { %v267_v0 = vld [vmem:[%s847_s1 + $0x78] sm:$0xff]  ;;  %v673_v1 = vmov 0.0   ;;  %v266_v2 = vld [vmem:[%s847_s1 + $0x70] sm:$0xff]  ;;  %vm674_vm0 = vmmov 0   ;;  %v265_v3 = vld [vmem:[%s847_s1 + $0x68] sm:$0xff]  ;;  %s227_s4 = scalar_select %p226_p11, %s663_s15, 1 }
  0x15   : > { %503 = vmatprep.subr.mxu0 %v673_v1  ;;  %535 = vmatprep.mubr.msk.f32.mxu0 %vm674_vm0, %v673_v1  ;;  %v264_v4 = vld [vmem:[%s847_s1 + $0x60] sm:$0xff]  ;;  %v263_v5 = vld [vmem:[%s847_s1 + $0x58] sm:$0xff]  ;;  %v262_v6 = vld [vmem:[%s847_s1 + $0x50] sm:$0xff]  ;;  %p597_p13 = pnand %p596_p12, %p736_p4  ;;  %s599_s23 = sshll.u32 %s675_s21, 4  ;;  %s600_s23 = int_to_ptr.vmem [resolvable:$false] %s599_s23 }
  0x16   : > { %504 = vmatpush3.msra.mxu0 %v267_v0  ;;  %v261_v7 = vld [vmem:[%s847_s1 + $0x48] sm:$0xff]  ;;  %v260_v8 = vld [vmem:[%s847_s1 + $0x40] sm:$0xff]  ;;  %v259_v9 = vld [vmem:[%s847_s1 + $0x38] sm:$0xff]  ;;  %s480_s9 = sshll.u32 %s227_s4, 3  ;;  %s601_s15 = scalar_lea.vmem %s600_s23, 256 }
  0x17   : > { %505 = vmatprep.subr.mxu0 %v673_v1  ;;  %v258_v10 = vld [vmem:[%s847_s1 + $0x30] sm:$0xff]  ;;  %v257_v11 = vld [vmem:[%s847_s1 + $0x28] sm:$0xff]  ;;  %v256_v12 = vld [vmem:[%s847_s1 + $0x20] sm:$0xff]  ;;  %s232_s26 = scalar_lea.vmem %s846_s0, %s480_s9  ;;  %p598_p0 = pneg %p597_p13 }
  0x18   : > { %506 = vmatpush3.msra.mxu0 %v266_v2  ;;  %v255_v13 = vld [vmem:[%s847_s1 + $0x18] sm:$0xff]  ;;  %v254_v14 = vld [vmem:[%s847_s1 + $0x10] sm:$0xff]  ;;  %v253_v15 = vld [vmem:[%s847_s1 + $0x8] sm:$0xff]  ;;  %p602_p1 = scmp.lt.s32.totalorder %s369_s8, %s600_s23  ;;  %p603_p2 = scmp.lt.s32.totalorder %s601_s15, %s595_s19 }
  0x19   : > { %507 = vmatprep.subr.mxu0 %v673_v1  ;;  %v252_v16 = vld [vmem:[%s847_s1] sm:$0xff] }
  0x1a   : > { %508 = vmatpush3.msra.mxu0 %v265_v3  ;;  %v251_v17 = vld [vmem:[%s232_s26] sm:$0xff]  ;;  %p604_p3 = por %p603_p2, %p602_p1 }
  0x1b   : > { %509 = vmatprep.subr.mxu0 %v673_v1  ;;  %v481_v19 = vld [vmem:[%s848_s2] ss:$0 sm:$0xff] }
  0x1c   : > { %510 = vmatpush3.msra.mxu0 %v264_v4  ;;  %p605_p5 = pnand %p604_p3, %p598_p0 }
  0x1d   : > { %511 = vmatprep.subr.mxu0 %v673_v1 }
  0x1e   : > { %512 = vmatpush3.msra.mxu0 %v263_v5 }
  0x1f   : > { %513 = vmatprep.subr.mxu0 %v673_v1 }
  0x20   : > { %514 = vmatpush3.msra.mxu0 %v262_v6 }
  0x21   : > { %515 = vmatprep.subr.mxu0 %v673_v1 }
  0x22   : > { %516 = vmatpush3.msra.mxu0 %v261_v7 }
  0x23   : > { %517 = vmatprep.subr.mxu0 %v673_v1 }
  0x24   : > { %518 = vmatpush3.msra.mxu0 %v260_v8 }
  0x25   : > { %519 = vmatprep.subr.mxu0 %v673_v1 }
  0x26   : > { %520 = vmatpush3.msra.mxu0 %v259_v9 }
  0x27   : > { %521 = vmatprep.subr.mxu0 %v673_v1 }
  0x28   : > { %522 = vmatpush3.msra.mxu0 %v258_v10 }
  0x29   : > { %523 = vmatprep.subr.mxu0 %v673_v1 }
  0x2a   : > { %524 = vmatpush3.msra.mxu0 %v257_v11 }
  0x2b   : > { %525 = vmatprep.subr.mxu0 %v673_v1 }
  0x2c   : > { %526 = vmatpush3.msra.mxu0 %v256_v12 }
  0x2d   : > { %527 = vmatprep.subr.mxu0 %v673_v1 }
  0x2e   : > { %528 = vmatpush3.msra.mxu0 %v255_v13 }
  0x2f   : > { %529 = vmatprep.subr.mxu0 %v673_v1 }
  0x30   : > { %530 = vmatpush3.msra.mxu0 %v254_v14 }
  0x31   : > { %531 = vmatprep.subr.mxu0 %v673_v1 }
  0x32   : > { %532 = vmatpush3.msra.mxu0 %v253_v15 }
  0x33   : > { %533 = vmatprep.subr.mxu0 %v673_v1 }
  0x34   : > { %534 = vmatpush3.msra.mxu0 %v252_v16 }
  0x35   : > { %536 = vmatmul.mubr.f32.vlgmr.msra.gmra.mxu0 %v251_v17 }
  0xf5   : > { %v334_v18 = vpop.f32.mrf.mxu0 }
  0xf6   : > { %v351_v21 = vadd.f32 %v481_v19, %v334_v18 }
  0xf7   : > { %v537_v20 = vpop.f32.mrf.mxu0 }
  0xf8   : > { %352 = vst [vmem:[%s225_s7] sm:$0xff] %v351_v21 }
  0xf9   : > { %608 = shalt.err (!%p605_p5)
}
  0xfa   : > { %s609_s26 = scalar_lea.hbm %s366_s11, 128  ;;  %s613_s29 = scalar_lea.hbm %s849_s3, 256 }
  0xfb   : > { %p610_p6 = scmp.ne.s32.totalorder %s366_s11, %s609_s26  ;;  %p614_p10 = scmp.lt.s32.totalorder %s366_s11, %s849_s3 }
  0xfc   : > { %p615_p11 = scmp.lt.s32.totalorder %s613_s29, %s609_s26 }
  0xfd   : > { %p611_p7 = pnand %p610_p6, %p736_p4 }
  0xfe   : > { %p616_p12 = por %p615_p11, %p614_p10 }
  0xff   : > { %p612_p9 = pneg %p611_p7 }
 0x101   : > { %p617_p13 = pnand %p616_p12, %p612_p9 }
 0x103   : > { %620 = shalt.err (!%p617_p13)
}
 0x104   : > { %538 = dma.vmem_to_hbm [thread:$0]  (%p736_p4), %s369_s8, 128, %s366_s11, %s354_s18  }
 0x105 PF: > { %p544_p0 = scmp.ge.s32.totalorder %s671_s17, 2  ;;  %s380_s5 = sand.u32 1, %s651_s12  }
 0x106   : > { %s381_s6 = scalar_lea.sflag [#allocation3], %s380_s5 }
 0x107   : > { %p541_p1 = pnand %p544_p0, %p743_p8 }
 0x109   : > { %p542_p2 = pneg %p541_p1 }
 0x10b   : > { %646 = dma.done.wait (%p542_p2), %s381_s6, 128  }
 0x10c   : > { %648 = vsyncadd (%p542_p2), %s381_s6, 4294967168  ;;  %s16_s17 = sadd.s32 1, %s671_s17   ;;  %s852_s12 = smov %s655_s13 }
 0x10d   : > { %p13_p3 = scmp.ge.s32.totalorder %s16_s17, 4   ;;  %s853_s13 = smov %s659_s14 }
 0x10e   : > { %s854_s14 = smov %s749_s25  ;;  %s855_s15 = smov %s667_s16 }
 0x10f   : > { %s856_s16 = smov %s858_s20  ;;  %15 = sbr.rel (!%p13_p3) target bundleno = 4 (0x4), region = 81 }
 0x114   :  { %386 = vsyncpa [#allocation3], 1 }
 0x115   :  { %388 = vsyncpa [#allocation3 + $0x1], 1 }

</bundles_post_ra>
